<compile_context>
chip_gen: v6e
topology: v6e:2x2x1
jax: 0.10.0
libtpu: 0.0.40
codegen_flags: <defaults>
</compile_context>

<pallas_src>
import jax
import jax.numpy as jnp
from jax import lax
from jax.experimental import pallas as pl
from jax.experimental.pallas import tpu as pltpu  # noqa: F401  (TPU backend)

# ---- small config consistent with the module ------------------------------
VOCAB = 50          # input_size
EMB = 32            # embedding_size
HID = 32            # hidden_size
OUT = 16            # output_size
N_LAYERS = 1
DIRECTIONS = 2      # bidirectional
B = 2               # batch
T = 8               # sequence length


# ---------------------------------------------------------------------------
# Kernel
# ---------------------------------------------------------------------------
def lstm_vocab_kernel(pre_ref,    # (T, BP, 8H)  per-step gate pre-activations
                      whh_ref,    # (2H, 8H)     block-diagonal recurrent weight
                      w12_ref,    # (2H, OUT)    fused fc1@out weight
                      b12_ref,    # (1, OUT)     fused fc1@out bias
                      out_ref):   # (B, OUT)
    T_, BP, G = pre_ref.shape     # static Python ints at trace time
    H2 = whh_ref.shape[0]         # 2H (lane-concatenated state width)
    B_ = out_ref.shape[0]

    whh = whh_ref[...]            # held live across the fully unrolled loop

    # Hoisted per-lane affine: gate-major layout is [i | f | g | o], each 2H
    # wide.  The x2 pre-scale on the g lanes is folded into the weights, so
    # a single sigmoid pass + one fma yields sigmoid on i/f/o and tanh on g
    # (tanh(x) = 2*sigmoid(2x) - 1).
    lane = lax.broadcasted_iota(jnp.int32, (BP, G), 1)
    is_g = (lane >= 2 * H2) & (lane < 3 * H2)
    mul = jnp.where(is_g, jnp.float32(2.0), jnp.float32(1.0))
    add = jnp.where(is_g, jnp.float32(-1.0), jnp.float32(0.0))

    h = jnp.zeros((BP, H2), jnp.float32)   # [h_fwd | h_bwd]
    c = jnp.zeros((BP, H2), jnp.float32)   # [c_fwd | c_bwd]

    # Fused bidirectional recurrence, fully unrolled (T_ is static).  One
    # block-diagonal MXU op + one EUP pass + cheap VPU updates per step.
    # Default MXU precision is accepted (no bit-exact PyTorch parity needed);
    # pass precision=lax.Precision.HIGHEST here if tight parity is required.
    for t in range(T_):
        gates = pre_ref[t] + jnp.dot(h, whh, preferred_element_type=jnp.float32)
        act = mul * jax.nn.sigmoid(gates) + add          # (BP, 8H)
        i = act[:, 0 * H2:1 * H2]
        f = act[:, 1 * H2:2 * H2]
        g = act[:, 2 * H2:3 * H2]
        o = act[:, 3 * H2:4 * H2]
        c = f * c + i * g
        h = o * jnp.tanh(c)

    # Fused head: (fc1 -> dropout(identity) -> out) == single matmul + bias.
    head = jnp.dot(h, w12_ref[...], preferred_element_type=jnp.float32) + b12_ref[...]
    out_ref[...] = head[:B_, :]


# ---------------------------------------------------------------------------
# Parameter init (PyTorch-layout raw params) + one-time prep
# ---------------------------------------------------------------------------
def init_params(key):
    """Deterministic raw parameters matching the PyTorch module's layouts."""
    ks = jax.random.split(key, 13)
    s = 0.1

    def rnd(k, shape):
        return s * jax.random.normal(k, shape, dtype=jnp.float32)

    return dict(
        embedding=rnd(ks[0], (VOCAB, EMB)),            # nn.Embedding
        w_ih_f=rnd(ks[1], (4 * HID, EMB)),             # weight_ih_l0  [i;f;g;o]
        w_hh_f=rnd(ks[2], (4 * HID, HID)),             # weight_hh_l0
        b_ih_f=rnd(ks[3], (4 * HID,)),
        b_hh_f=rnd(ks[4], (4 * HID,)),
        w_ih_b=rnd(ks[5], (4 * HID, EMB)),             # *_reverse
        w_hh_b=rnd(ks[6], (4 * HID, HID)),
        b_ih_b=rnd(ks[7], (4 * HID,)),
        b_hh_b=rnd(ks[8], (4 * HID,)),
        w1=rnd(ks[9], (HID, DIRECTIONS * HID)),        # fc1: Linear(2H, H)
        b1=rnd(ks[10], (HID,)),
        w2=rnd(ks[11], (OUT, HID)),                    # out: Linear(H, OUT)
        b2=rnd(ks[12], (OUT,)),
    )


def prepare_params(raw):
    """One-time weight reshuffle (hoisted out of the per-call forward)."""
    H = HID
    f32 = jnp.float32
    emb = raw["embedding"].astype(f32)

    # Fold the tanh->sigmoid pre-scale (x2) into the g-gate rows.
    gate_scale = jnp.ones((4 * H, 1), f32).at[2 * H:3 * H].set(2.0)

    def direction(w_ih, w_hh, b_ih, b_hh):
        w_ih = w_ih * gate_scale
        w_hh = w_hh * gate_scale
        b = (b_ih + b_hh) * gate_scale[:, 0]
        pre_table = emb @ w_ih.T + b          # (V, 4H): token -> gate pre-act
        rec = w_hh.T                          # (H, 4H)
        return pre_table, rec

    pre_f, rec_f = direction(raw["w_ih_f"], raw["w_hh_f"], raw["b_ih_f"], raw["b_hh_f"])
    pre_b, rec_b = direction(raw["w_ih_b"], raw["w_hh_b"], raw["b_ih_b"], raw["b_hh_b"])

    # Gate-major column layout: [i_f i_b | f_f f_b | g_f g_b | o_f o_b].
    def interleave(a_f, a_b):
        cols = []
        for q in range(4):
            cols.append(a_f[..., q * H:(q + 1) * H])
            cols.append(a_b[..., q * H:(q + 1) * H])
        return jnp.concatenate(cols, axis=-1)

    proj_table = interleave(pre_f, pre_b)                      # (V, 8H)

    # Block-diagonal recurrent weight: rows 0:H = h_fwd -> fwd-gate columns,
    # rows H:2H = h_bwd -> bwd-gate columns, zeros elsewhere.
    whh_bd = jnp.zeros((2 * H, 8 * H), f32)
    for q in range(4):
        whh_bd = whh_bd.at[0:H, q * 2 * H:q * 2 * H + H].set(rec_f[:, q * H:(q + 1) * H])
        whh_bd = whh_bd.at[H:2 * H, q * 2 * H + H:(q + 1) * 2 * H].set(rec_b[:, q * H:(q + 1) * H])

    # Fused head (eval mode: dropout is identity, no nonlinearity between
    # fc1 and out): out = h_cat @ W12 + b12.
    w12 = raw["w1"].T @ raw["w2"].T                            # (2H, OUT)
    b12 = (raw["b1"] @ raw["w2"].T + raw["b2"]).reshape(1, OUT)

    # Lane mask: even H-blocks are forward-direction columns.
    lane = jnp.arange(8 * H)
    fwd_lane_mask = ((lane // H) % 2 == 0).reshape(1, 1, 8 * H)

    return dict(proj_table=proj_table, whh_bd=whh_bd, w12=w12, b12=b12,
                fwd_lane_mask=fwd_lane_mask)


# ---------------------------------------------------------------------------
# Forward wrapper (per call: gather + reverse-backward-half + pad + kernel)
# ---------------------------------------------------------------------------
def lstm_vocab_forward(tokens, prep):
    B_, T_ = tokens.shape
    BP = ((B_ + 7) // 8) * 8                      # pad batch to sublane tile

    # Per-token gate pre-activations, time-major: (T, B, 8H).
    g = jnp.take(prep["proj_table"], tokens.T, axis=0)
    # Pre-reverse the backward-direction lanes in time so each kernel step
    # reads a single contiguous tile (fwd lanes: token t, bwd lanes: token T-1-t).
    pre = jnp.where(prep["fwd_lane_mask"], g, g[::-1])
    pre = jnp.pad(pre, ((0, 0), (0, BP - B_), (0, 0)))          # (T, BP, 8H)

    out = pl.pallas_call(
        lstm_vocab_kernel,
        out_shape=jax.ShapeDtypeStruct((B_, OUT), jnp.float32),
    )(pre, prep["whh_bd"], prep["w12"], prep["b12"])
    return out


if __name__ == "__main__":
    key = jax.random.PRNGKey(0)
    k_tok, k_par = jax.random.split(key)

    # input_sentence: integer token ids, shape (B, T)
    tokens = jax.random.randint(k_tok, (B, T), 0, VOCAB, dtype=jnp.int32)
    raw = init_params(k_par)
    prep = prepare_params(raw)            # one-time weight prep (not per call)

    fwd = jax.jit(lstm_vocab_forward)
    out = jax.block_until_ready(fwd(tokens, prep))
    assert out.shape == (B, OUT)
    print("KERNEL_OK")
</pallas_src>

<mosaic_0001>
module attributes {stable_mosaic.version = 11 : i64} {
  func.func @lstm_vocab_kernel(%arg0: memref<8x8x256xf32, #tpu.memory_space<vmem>>, %arg1: memref<64x256xf32, #tpu.memory_space<vmem>>, %arg2: memref<64x16xf32, #tpu.memory_space<vmem>>, %arg3: memref<1x16xf32, #tpu.memory_space<vmem>>, %arg4: memref<2x16xf32, #tpu.memory_space<vmem>>) attributes {dimension_semantics = [], scalar_prefetch = 0 : i64, scratch_operands = 0 : i64, tpu.core_type = #tpu.core_type<tc>} {
    %c0 = arith.constant 0 : index
    %c0_0 = arith.constant 0 : index
    %0 = vector.load %arg1[%c0, %c0_0] : memref<64x256xf32, #tpu.memory_space<vmem>>, vector<64x256xf32>
    %1 = tpu.iota {dimensions = array<i32: 1>} : vector<8x256xi32>
    %c128_i32 = arith.constant 128 : i32
    %2 = vector.broadcast %c128_i32 : i32 to vector<8x256xi32>
    %3 = arith.cmpi sge, %1, %2 : vector<8x256xi32>
    %c192_i32 = arith.constant 192 : i32
    %4 = vector.broadcast %c192_i32 : i32 to vector<8x256xi32>
    %5 = arith.cmpi slt, %1, %4 : vector<8x256xi32>
    %6 = arith.andi %3, %5 : vector<8x256xi1>
    %cst = arith.constant 2.000000e+00 : f32
    %cst_1 = arith.constant 1.000000e+00 : f32
    %7 = vector.broadcast %cst : f32 to vector<8x256xf32>
    %8 = vector.broadcast %cst_1 : f32 to vector<8x256xf32>
    %9 = arith.select %6, %7, %8 : vector<8x256xi1>, vector<8x256xf32>
    %cst_2 = arith.constant -1.000000e+00 : f32
    %cst_3 = arith.constant 0.000000e+00 : f32
    %10 = vector.broadcast %cst_2 : f32 to vector<8x256xf32>
    %11 = vector.broadcast %cst_3 : f32 to vector<8x256xf32>
    %12 = arith.select %6, %10, %11 : vector<8x256xi1>, vector<8x256xf32>
    %cst_4 = arith.constant 0.000000e+00 : f32
    %13 = vector.broadcast %cst_4 : f32 to vector<8x64xf32>
    %cst_5 = arith.constant 0.000000e+00 : f32
    %14 = vector.broadcast %cst_5 : f32 to vector<8x64xf32>
    %c0_6 = arith.constant 0 : index
    %c0_7 = arith.constant 0 : index
    %c0_8 = arith.constant 0 : index
    %15 = vector.load %arg0[%c0_6, %c0_7, %c0_8] : memref<8x8x256xf32, #tpu.memory_space<vmem>>, vector<1x8x256xf32>
    %16 = vector.shape_cast %15 : vector<1x8x256xf32> to vector<8x256xf32>
    %cst_9 = arith.constant dense<0.000000e+00> : vector<8x256xf32>
    %17 = tpu.matmul %13, %0, %cst_9 {dimension_numbers = #tpu.dot_dimension_numbers<[1], [0], [0], [1], [0, 0, 1, 1], [], []>} : vector<8x64xf32>, vector<64x256xf32>, vector<8x256xf32> -> vector<8x256xf32>
    %18 = arith.addf %16, %17 : vector<8x256xf32>
    %19 = arith.negf %18 : vector<8x256xf32>
    %20 = math.exp %19 : vector<8x256xf32>
    %cst_10 = arith.constant 1.000000e+00 : f32
    %21 = vector.broadcast %cst_10 : f32 to vector<8x256xf32>
    %22 = arith.addf %21, %20 : vector<8x256xf32>
    %23 = arith.divf %21, %22 : vector<8x256xf32>
    %24 = arith.mulf %9, %23 : vector<8x256xf32>
    %25 = arith.addf %24, %12 : vector<8x256xf32>
    %26 = vector.extract_strided_slice %25 {offsets = [0, 0], sizes = [8, 64], strides = [1, 1]} : vector<8x256xf32> to vector<8x64xf32>
    %27 = vector.extract_strided_slice %25 {offsets = [0, 64], sizes = [8, 64], strides = [1, 1]} : vector<8x256xf32> to vector<8x64xf32>
    %28 = vector.extract_strided_slice %25 {offsets = [0, 128], sizes = [8, 64], strides = [1, 1]} : vector<8x256xf32> to vector<8x64xf32>
    %29 = vector.extract_strided_slice %25 {offsets = [0, 192], sizes = [8, 64], strides = [1, 1]} : vector<8x256xf32> to vector<8x64xf32>
    %30 = arith.mulf %27, %14 : vector<8x64xf32>
    %31 = arith.mulf %26, %28 : vector<8x64xf32>
    %32 = arith.addf %30, %31 : vector<8x64xf32>
    %33 = math.tanh %32 : vector<8x64xf32>
    %34 = arith.mulf %29, %33 : vector<8x64xf32>
    %c1 = arith.constant 1 : index
    %c0_11 = arith.constant 0 : index
    %c0_12 = arith.constant 0 : index
    %35 = vector.load %arg0[%c1, %c0_11, %c0_12] : memref<8x8x256xf32, #tpu.memory_space<vmem>>, vector<1x8x256xf32>
    %36 = vector.shape_cast %35 : vector<1x8x256xf32> to vector<8x256xf32>
    %cst_13 = arith.constant dense<0.000000e+00> : vector<8x256xf32>
    %37 = tpu.matmul %34, %0, %cst_13 {dimension_numbers = #tpu.dot_dimension_numbers<[1], [0], [0], [1], [0, 0, 1, 1], [], []>} : vector<8x64xf32>, vector<64x256xf32>, vector<8x256xf32> -> vector<8x256xf32>
    %38 = arith.addf %36, %37 : vector<8x256xf32>
    %39 = arith.negf %38 : vector<8x256xf32>
    %40 = math.exp %39 : vector<8x256xf32>
    %cst_14 = arith.constant 1.000000e+00 : f32
    %41 = vector.broadcast %cst_14 : f32 to vector<8x256xf32>
    %42 = arith.addf %41, %40 : vector<8x256xf32>
    %43 = arith.divf %41, %42 : vector<8x256xf32>
    %44 = arith.mulf %9, %43 : vector<8x256xf32>
    %45 = arith.addf %44, %12 : vector<8x256xf32>
    %46 = vector.extract_strided_slice %45 {offsets = [0, 0], sizes = [8, 64], strides = [1, 1]} : vector<8x256xf32> to vector<8x64xf32>
    %47 = vector.extract_strided_slice %45 {offsets = [0, 64], sizes = [8, 64], strides = [1, 1]} : vector<8x256xf32> to vector<8x64xf32>
    %48 = vector.extract_strided_slice %45 {offsets = [0, 128], sizes = [8, 64], strides = [1, 1]} : vector<8x256xf32> to vector<8x64xf32>
    %49 = vector.extract_strided_slice %45 {offsets = [0, 192], sizes = [8, 64], strides = [1, 1]} : vector<8x256xf32> to vector<8x64xf32>
    %50 = arith.mulf %47, %32 : vector<8x64xf32>
    %51 = arith.mulf %46, %48 : vector<8x64xf32>
    %52 = arith.addf %50, %51 : vector<8x64xf32>
    %53 = math.tanh %52 : vector<8x64xf32>
    %54 = arith.mulf %49, %53 : vector<8x64xf32>
    %c2 = arith.constant 2 : index
    %c0_15 = arith.constant 0 : index
    %c0_16 = arith.constant 0 : index
    %55 = vector.load %arg0[%c2, %c0_15, %c0_16] : memref<8x8x256xf32, #tpu.memory_space<vmem>>, vector<1x8x256xf32>
    %56 = vector.shape_cast %55 : vector<1x8x256xf32> to vector<8x256xf32>
    %cst_17 = arith.constant dense<0.000000e+00> : vector<8x256xf32>
    %57 = tpu.matmul %54, %0, %cst_17 {dimension_numbers = #tpu.dot_dimension_numbers<[1], [0], [0], [1], [0, 0, 1, 1], [], []>} : vector<8x64xf32>, vector<64x256xf32>, vector<8x256xf32> -> vector<8x256xf32>
    %58 = arith.addf %56, %57 : vector<8x256xf32>
    %59 = arith.negf %58 : vector<8x256xf32>
    %60 = math.exp %59 : vector<8x256xf32>
    %cst_18 = arith.constant 1.000000e+00 : f32
    %61 = vector.broadcast %cst_18 : f32 to vector<8x256xf32>
    %62 = arith.addf %61, %60 : vector<8x256xf32>
    %63 = arith.divf %61, %62 : vector<8x256xf32>
    %64 = arith.mulf %9, %63 : vector<8x256xf32>
    %65 = arith.addf %64, %12 : vector<8x256xf32>
    %66 = vector.extract_strided_slice %65 {offsets = [0, 0], sizes = [8, 64], strides = [1, 1]} : vector<8x256xf32> to vector<8x64xf32>
    %67 = vector.extract_strided_slice %65 {offsets = [0, 64], sizes = [8, 64], strides = [1, 1]} : vector<8x256xf32> to vector<8x64xf32>
    %68 = vector.extract_strided_slice %65 {offsets = [0, 128], sizes = [8, 64], strides = [1, 1]} : vector<8x256xf32> to vector<8x64xf32>
    %69 = vector.extract_strided_slice %65 {offsets = [0, 192], sizes = [8, 64], strides = [1, 1]} : vector<8x256xf32> to vector<8x64xf32>
    %70 = arith.mulf %67, %52 : vector<8x64xf32>
    %71 = arith.mulf %66, %68 : vector<8x64xf32>
    %72 = arith.addf %70, %71 : vector<8x64xf32>
    %73 = math.tanh %72 : vector<8x64xf32>
    %74 = arith.mulf %69, %73 : vector<8x64xf32>
    %c3 = arith.constant 3 : index
    %c0_19 = arith.constant 0 : index
    %c0_20 = arith.constant 0 : index
    %75 = vector.load %arg0[%c3, %c0_19, %c0_20] : memref<8x8x256xf32, #tpu.memory_space<vmem>>, vector<1x8x256xf32>
    %76 = vector.shape_cast %75 : vector<1x8x256xf32> to vector<8x256xf32>
    %cst_21 = arith.constant dense<0.000000e+00> : vector<8x256xf32>
    %77 = tpu.matmul %74, %0, %cst_21 {dimension_numbers = #tpu.dot_dimension_numbers<[1], [0], [0], [1], [0, 0, 1, 1], [], []>} : vector<8x64xf32>, vector<64x256xf32>, vector<8x256xf32> -> vector<8x256xf32>
    %78 = arith.addf %76, %77 : vector<8x256xf32>
    %79 = arith.negf %78 : vector<8x256xf32>
    %80 = math.exp %79 : vector<8x256xf32>
    %cst_22 = arith.constant 1.000000e+00 : f32
    %81 = vector.broadcast %cst_22 : f32 to vector<8x256xf32>
    %82 = arith.addf %81, %80 : vector<8x256xf32>
    %83 = arith.divf %81, %82 : vector<8x256xf32>
    %84 = arith.mulf %9, %83 : vector<8x256xf32>
    %85 = arith.addf %84, %12 : vector<8x256xf32>
    %86 = vector.extract_strided_slice %85 {offsets = [0, 0], sizes = [8, 64], strides = [1, 1]} : vector<8x256xf32> to vector<8x64xf32>
    %87 = vector.extract_strided_slice %85 {offsets = [0, 64], sizes = [8, 64], strides = [1, 1]} : vector<8x256xf32> to vector<8x64xf32>
    %88 = vector.extract_strided_slice %85 {offsets = [0, 128], sizes = [8, 64], strides = [1, 1]} : vector<8x256xf32> to vector<8x64xf32>
    %89 = vector.extract_strided_slice %85 {offsets = [0, 192], sizes = [8, 64], strides = [1, 1]} : vector<8x256xf32> to vector<8x64xf32>
    %90 = arith.mulf %87, %72 : vector<8x64xf32>
    %91 = arith.mulf %86, %88 : vector<8x64xf32>
    %92 = arith.addf %90, %91 : vector<8x64xf32>
    %93 = math.tanh %92 : vector<8x64xf32>
    %94 = arith.mulf %89, %93 : vector<8x64xf32>
    %c4 = arith.constant 4 : index
    %c0_23 = arith.constant 0 : index
    %c0_24 = arith.constant 0 : index
    %95 = vector.load %arg0[%c4, %c0_23, %c0_24] : memref<8x8x256xf32, #tpu.memory_space<vmem>>, vector<1x8x256xf32>
    %96 = vector.shape_cast %95 : vector<1x8x256xf32> to vector<8x256xf32>
    %cst_25 = arith.constant dense<0.000000e+00> : vector<8x256xf32>
    %97 = tpu.matmul %94, %0, %cst_25 {dimension_numbers = #tpu.dot_dimension_numbers<[1], [0], [0], [1], [0, 0, 1, 1], [], []>} : vector<8x64xf32>, vector<64x256xf32>, vector<8x256xf32> -> vector<8x256xf32>
    %98 = arith.addf %96, %97 : vector<8x256xf32>
    %99 = arith.negf %98 : vector<8x256xf32>
    %100 = math.exp %99 : vector<8x256xf32>
    %cst_26 = arith.constant 1.000000e+00 : f32
    %101 = vector.broadcast %cst_26 : f32 to vector<8x256xf32>
    %102 = arith.addf %101, %100 : vector<8x256xf32>
    %103 = arith.divf %101, %102 : vector<8x256xf32>
    %104 = arith.mulf %9, %103 : vector<8x256xf32>
    %105 = arith.addf %104, %12 : vector<8x256xf32>
    %106 = vector.extract_strided_slice %105 {offsets = [0, 0], sizes = [8, 64], strides = [1, 1]} : vector<8x256xf32> to vector<8x64xf32>
    %107 = vector.extract_strided_slice %105 {offsets = [0, 64], sizes = [8, 64], strides = [1, 1]} : vector<8x256xf32> to vector<8x64xf32>
    %108 = vector.extract_strided_slice %105 {offsets = [0, 128], sizes = [8, 64], strides = [1, 1]} : vector<8x256xf32> to vector<8x64xf32>
    %109 = vector.extract_strided_slice %105 {offsets = [0, 192], sizes = [8, 64], strides = [1, 1]} : vector<8x256xf32> to vector<8x64xf32>
    %110 = arith.mulf %107, %92 : vector<8x64xf32>
    %111 = arith.mulf %106, %108 : vector<8x64xf32>
    %112 = arith.addf %110, %111 : vector<8x64xf32>
    %113 = math.tanh %112 : vector<8x64xf32>
    %114 = arith.mulf %109, %113 : vector<8x64xf32>
    %c5 = arith.constant 5 : index
    %c0_27 = arith.constant 0 : index
    %c0_28 = arith.constant 0 : index
    %115 = vector.load %arg0[%c5, %c0_27, %c0_28] : memref<8x8x256xf32, #tpu.memory_space<vmem>>, vector<1x8x256xf32>
    %116 = vector.shape_cast %115 : vector<1x8x256xf32> to vector<8x256xf32>
    %cst_29 = arith.constant dense<0.000000e+00> : vector<8x256xf32>
    %117 = tpu.matmul %114, %0, %cst_29 {dimension_numbers = #tpu.dot_dimension_numbers<[1], [0], [0], [1], [0, 0, 1, 1], [], []>} : vector<8x64xf32>, vector<64x256xf32>, vector<8x256xf32> -> vector<8x256xf32>
    %118 = arith.addf %116, %117 : vector<8x256xf32>
    %119 = arith.negf %118 : vector<8x256xf32>
    %120 = math.exp %119 : vector<8x256xf32>
    %cst_30 = arith.constant 1.000000e+00 : f32
    %121 = vector.broadcast %cst_30 : f32 to vector<8x256xf32>
    %122 = arith.addf %121, %120 : vector<8x256xf32>
    %123 = arith.divf %121, %122 : vector<8x256xf32>
    %124 = arith.mulf %9, %123 : vector<8x256xf32>
    %125 = arith.addf %124, %12 : vector<8x256xf32>
    %126 = vector.extract_strided_slice %125 {offsets = [0, 0], sizes = [8, 64], strides = [1, 1]} : vector<8x256xf32> to vector<8x64xf32>
    %127 = vector.extract_strided_slice %125 {offsets = [0, 64], sizes = [8, 64], strides = [1, 1]} : vector<8x256xf32> to vector<8x64xf32>
    %128 = vector.extract_strided_slice %125 {offsets = [0, 128], sizes = [8, 64], strides = [1, 1]} : vector<8x256xf32> to vector<8x64xf32>
    %129 = vector.extract_strided_slice %125 {offsets = [0, 192], sizes = [8, 64], strides = [1, 1]} : vector<8x256xf32> to vector<8x64xf32>
    %130 = arith.mulf %127, %112 : vector<8x64xf32>
    %131 = arith.mulf %126, %128 : vector<8x64xf32>
    %132 = arith.addf %130, %131 : vector<8x64xf32>
    %133 = math.tanh %132 : vector<8x64xf32>
    %134 = arith.mulf %129, %133 : vector<8x64xf32>
    %c6 = arith.constant 6 : index
    %c0_31 = arith.constant 0 : index
    %c0_32 = arith.constant 0 : index
    %135 = vector.load %arg0[%c6, %c0_31, %c0_32] : memref<8x8x256xf32, #tpu.memory_space<vmem>>, vector<1x8x256xf32>
    %136 = vector.shape_cast %135 : vector<1x8x256xf32> to vector<8x256xf32>
    %cst_33 = arith.constant dense<0.000000e+00> : vector<8x256xf32>
    %137 = tpu.matmul %134, %0, %cst_33 {dimension_numbers = #tpu.dot_dimension_numbers<[1], [0], [0], [1], [0, 0, 1, 1], [], []>} : vector<8x64xf32>, vector<64x256xf32>, vector<8x256xf32> -> vector<8x256xf32>
    %138 = arith.addf %136, %137 : vector<8x256xf32>
    %139 = arith.negf %138 : vector<8x256xf32>
    %140 = math.exp %139 : vector<8x256xf32>
    %cst_34 = arith.constant 1.000000e+00 : f32
    %141 = vector.broadcast %cst_34 : f32 to vector<8x256xf32>
    %142 = arith.addf %141, %140 : vector<8x256xf32>
    %143 = arith.divf %141, %142 : vector<8x256xf32>
    %144 = arith.mulf %9, %143 : vector<8x256xf32>
    %145 = arith.addf %144, %12 : vector<8x256xf32>
    %146 = vector.extract_strided_slice %145 {offsets = [0, 0], sizes = [8, 64], strides = [1, 1]} : vector<8x256xf32> to vector<8x64xf32>
    %147 = vector.extract_strided_slice %145 {offsets = [0, 64], sizes = [8, 64], strides = [1, 1]} : vector<8x256xf32> to vector<8x64xf32>
    %148 = vector.extract_strided_slice %145 {offsets = [0, 128], sizes = [8, 64], strides = [1, 1]} : vector<8x256xf32> to vector<8x64xf32>
    %149 = vector.extract_strided_slice %145 {offsets = [0, 192], sizes = [8, 64], strides = [1, 1]} : vector<8x256xf32> to vector<8x64xf32>
    %150 = arith.mulf %147, %132 : vector<8x64xf32>
    %151 = arith.mulf %146, %148 : vector<8x64xf32>
    %152 = arith.addf %150, %151 : vector<8x64xf32>
    %153 = math.tanh %152 : vector<8x64xf32>
    %154 = arith.mulf %149, %153 : vector<8x64xf32>
    %c7 = arith.constant 7 : index
    %c0_35 = arith.constant 0 : index
    %c0_36 = arith.constant 0 : index
    %155 = vector.load %arg0[%c7, %c0_35, %c0_36] : memref<8x8x256xf32, #tpu.memory_space<vmem>>, vector<1x8x256xf32>
    %156 = vector.shape_cast %155 : vector<1x8x256xf32> to vector<8x256xf32>
    %cst_37 = arith.constant dense<0.000000e+00> : vector<8x256xf32>
    %157 = tpu.matmul %154, %0, %cst_37 {dimension_numbers = #tpu.dot_dimension_numbers<[1], [0], [0], [1], [0, 0, 1, 1], [], []>} : vector<8x64xf32>, vector<64x256xf32>, vector<8x256xf32> -> vector<8x256xf32>
    %158 = arith.addf %156, %157 : vector<8x256xf32>
    %159 = arith.negf %158 : vector<8x256xf32>
    %160 = math.exp %159 : vector<8x256xf32>
    %cst_38 = arith.constant 1.000000e+00 : f32
    %161 = vector.broadcast %cst_38 : f32 to vector<8x256xf32>
    %162 = arith.addf %161, %160 : vector<8x256xf32>
    %163 = arith.divf %161, %162 : vector<8x256xf32>
    %164 = arith.mulf %9, %163 : vector<8x256xf32>
    %165 = arith.addf %164, %12 : vector<8x256xf32>
    %166 = vector.extract_strided_slice %165 {offsets = [0, 0], sizes = [8, 64], strides = [1, 1]} : vector<8x256xf32> to vector<8x64xf32>
    %167 = vector.extract_strided_slice %165 {offsets = [0, 64], sizes = [8, 64], strides = [1, 1]} : vector<8x256xf32> to vector<8x64xf32>
    %168 = vector.extract_strided_slice %165 {offsets = [0, 128], sizes = [8, 64], strides = [1, 1]} : vector<8x256xf32> to vector<8x64xf32>
    %169 = vector.extract_strided_slice %165 {offsets = [0, 192], sizes = [8, 64], strides = [1, 1]} : vector<8x256xf32> to vector<8x64xf32>
    %170 = arith.mulf %167, %152 : vector<8x64xf32>
    %171 = arith.mulf %166, %168 : vector<8x64xf32>
    %172 = arith.addf %170, %171 : vector<8x64xf32>
    %173 = math.tanh %172 : vector<8x64xf32>
    %174 = arith.mulf %169, %173 : vector<8x64xf32>
    %c0_39 = arith.constant 0 : index
    %c0_40 = arith.constant 0 : index
    %175 = vector.load %arg2[%c0_39, %c0_40] : memref<64x16xf32, #tpu.memory_space<vmem>>, vector<64x16xf32>
    %cst_41 = arith.constant dense<0.000000e+00> : vector<8x16xf32>
    %176 = tpu.matmul %174, %175, %cst_41 {dimension_numbers = #tpu.dot_dimension_numbers<[1], [0], [0], [1], [0, 0, 1, 1], [], []>} : vector<8x64xf32>, vector<64x16xf32>, vector<8x16xf32> -> vector<8x16xf32>
    %c0_42 = arith.constant 0 : index
    %c0_43 = arith.constant 0 : index
    %177 = vector.load %arg3[%c0_42, %c0_43] : memref<1x16xf32, #tpu.memory_space<vmem>>, vector<1x16xf32>
    %178 = vector.broadcast %177 : vector<1x16xf32> to vector<8x16xf32>
    %179 = arith.addf %176, %178 : vector<8x16xf32>
    %180 = vector.extract_strided_slice %179 {offsets = [0, 0], sizes = [2, 16], strides = [1, 1]} : vector<8x16xf32> to vector<2x16xf32>
    %c0_44 = arith.constant 0 : index
    %c0_45 = arith.constant 0 : index
    %181 = vector.load %arg4[%c0_44, %c0_45] : memref<2x16xf32, #tpu.memory_space<vmem>>, vector<2x16xf32>
    tpu.vector_store %arg4[%c0_44, %c0_45], %180 {strides = array<i32>} : memref<2x16xf32, #tpu.memory_space<vmem>>, vector<2x16xf32>,
    return
  }
}

</mosaic_0001>

<bundles_post_ra>
// kernel: lstm_vocab_forward.1
= control target key start
LH: loop header
LB: loop body
LE: loop exit
PB: predicated region body
PF: predicated region fallthrough
CT: control target
= control target key end

     0   :  { %v1173_v4 = vmov 0.0   ;;  %s1552_s0 = inlined_call_operand.vmem [shape: f32[8,8,256], index: 0, kind: input, shape index: {}]   ;;  %s1553_s1 = inlined_call_operand.vmem [shape: f32[64,256], index: 1, kind: input, shape index: {}]   ;;  %s1554_s2 = inlined_call_operand.vmem [shape: f32[64,16], index: 2, kind: input, shape index: {}]   ;;  %s1555_s3 = inlined_call_operand.vmem [shape: f32[1,16], index: 3, kind: input, shape index: {}]   ;;  %s1556_s4 = inlined_call_operand.hbm [shape: f32[2,16], index: 4, kind: output, shape index: {}]  }
   0x1   :  { %v1206_v0 = vld [vmem:[%s1553_s1 + $0x78] sm:$0xff]  ;;  %v1211_v1 = vld [vmem:[%s1553_s1 + $0x70] sm:$0xff]  ;;  %v1216_v2 = vld [vmem:[%s1553_s1 + $0x68] sm:$0xff]  ;;  %117 = vmatprep.mubr.f32.mxu0 %v1173_v4 }
   0x2   :  { %69 = vmatprep.subr.mxu0 %v1206_v0  ;;  %v1222_v3 = vld [vmem:[%s1553_s1 + $0x60] sm:$0xff]  ;;  %v1229_v5 = vld [vmem:[%s1553_s1 + $0x58] sm:$0xff]  ;;  %175 = vmatprep.subr.mxu1 %v1206_v0  ;;  %v1236_v6 = vld [vmem:[%s1553_s1 + $0x50] sm:$0xff] }
   0x3   :  { %70 = vmatpush1.msra.mxu0 %v1211_v1  ;;  %176 = vmatpush1.msra.mxu1 %v1211_v1  ;;  %v1243_v7 = vld [vmem:[%s1553_s1 + $0x48] sm:$0xff]  ;;  %v1250_v8 = vld [vmem:[%s1553_s1 + $0x40] sm:$0xff] }
   0x4   :  { %71 = vmatprep.subr.mxu0 %v1216_v2  ;;  %177 = vmatprep.subr.mxu1 %v1216_v2 }
   0x5   :  { %72 = vmatpush1.msra.mxu0 %v1222_v3  ;;  %178 = vmatpush1.msra.mxu1 %v1222_v3 }
   0x6   :  { %73 = vmatprep.subr.mxu0 %v1229_v5 }
   0x7   :  { %9 = vsyncpa [#allocation3], 0  ;;  %74 = vmatpush1.msra.mxu0 %v1236_v6  ;;  %v1257_v9 = vld [vmem:[%s1553_s1 + $0x38] sm:$0xff]  ;;  %179 = vmatprep.subr.mxu1 %v1229_v5  ;;  %v1264_v10 = vld [vmem:[%s1553_s1 + $0x30] sm:$0xff]  ;;  %v34_v26 = vlaneseq  ;;  %v1174_v32 = vmov 1.0   ;;  %s1175_s24 = smov 64  }
   0x8   :  { %75 = vmatprep.subr.mxu0 %v1243_v7  ;;  %180 = vmatpush1.msra.mxu1 %v1236_v6  ;;  %v1271_v11 = vld [vmem:[%s1553_s1 + $0x28] sm:$0xff]  ;;  %v1278_v12 = vld [vmem:[%s1553_s1 + $0x20] sm:$0xff]  ;;  %v1285_v13 = vld [vmem:[%s1553_s1 + $0x18] sm:$0xff]  ;;  %vm49_vm1 = vcmask 523264   ;;  %vm1176_vm2 = vmmov 0   ;;  %vm983_vm3 = vcmask 123904  }
   0x9   :  { %76 = vmatpush1.msra.mxu0 %v1250_v8  ;;  %181 = vmatprep.subr.mxu1 %v1243_v7  ;;  %v1292_v14 = vld [vmem:[%s1553_s1 + $0x10] sm:$0xff]  ;;  %v1299_v15 = vld [vmem:[%s1553_s1 + $0x8] sm:$0xff]  ;;  %v1306_v16 = vld [vmem:[%s1553_s1] sm:$0xff]  ;;  %v35_v30 = vand.u32 127, %v34_v26 }
   0xa   :  { %77 = vmatprep.subr.mxu0 %v1257_v9  ;;  %182 = vmatpush1.msra.mxu1 %v1250_v8  ;;  %v47_v17 = vld [vmem:[%s1552_s0] sm:$0xff]  ;;  %v48_v19 = vld [vmem:[%s1552_s0 + $0x8] sm:$0xff]  ;;  %v1001_v46 = vld [vmem:[%s1552_s0 + $0x10] sm:$0xff] }
   0xb   :  { %78 = vmatpush1.msra.mxu0 %v1264_v10  ;;  %183 = vmatprep.subr.mxu1 %v1257_v9  ;;  %v36_v31 = vadd.s32 128, %v35_v30  ;;  %v1002_v48 = vld [vmem:[%s1552_s0 + $0x18] sm:$0xff] }
   0xc   :  { %79 = vmatprep.subr.mxu0 %v1271_v11  ;;  %184 = vmatpush1.msra.mxu1 %v1264_v10 }
   0xd   :  { %80 = vmatpush1.msra.mxu0 %v1278_v12  ;;  %185 = vmatprep.subr.mxu1 %v1271_v11  ;;  %vm40_vm0 = vcmp.lt.s32.totalorder %v36_v31, 192 }
   0xe   :  { %81 = vmatprep.subr.mxu0 %v1285_v13  ;;  %186 = vmatpush1.msra.mxu1 %v1278_v12  ;;  %v1343_v33 = vsel %vm40_vm0, 2.0, %v1174_v32  ;;  %v1346_v35 = vsel %vm40_vm0, -1.0, %v1173_v4 }
   0xf   :  { %82 = vmatpush1.msra.mxu0 %v1292_v14  ;;  %187 = vmatprep.subr.mxu1 %v1285_v13 }
  0x10   :  { %83 = vmatprep.subr.mxu0 %v1299_v15  ;;  %188 = vmatpush1.msra.mxu1 %v1292_v14 }
  0x11   :  { %84 = vmatpush1.msra.mxu0 %v1306_v16  ;;  %189 = vmatprep.subr.mxu1 %v1299_v15 }
  0x12   :  { %118 = vmatmul.mubr.f32.vlgmr.msra.gmra.mxu0 %v1173_v4  ;;  %190 = vmatpush1.msra.mxu1 %v1306_v16 }
  0x13   :  { %223 = vmatprep.mubr.f32.mxu1 %v1173_v4  ;;  %281 = vmatprep.subr.mxu0 %v1206_v0 }
  0x14   :  { %282 = vmatpush1.msra.mxu0 %v1211_v1  ;;  %329 = vmatprep.mubr.f32.mxu0 %v1173_v4 }
  0x15   :  { %283 = vmatprep.subr.mxu0 %v1216_v2  ;;  %387 = vmatprep.subr.mxu1 %v1206_v0 }
  0x16   :  { %284 = vmatpush1.msra.mxu0 %v1222_v3 }
  0x17   :  { %285 = vmatprep.subr.mxu0 %v1229_v5 }
  0x18   :  { %286 = vmatpush1.msra.mxu0 %v1236_v6 }
  0x19   :  { %287 = vmatprep.subr.mxu0 %v1243_v7 }
  0x1a   :  { %288 = vmatpush1.msra.mxu0 %v1250_v8 }
  0x1b   :  { %289 = vmatprep.subr.mxu0 %v1257_v9 }
  0x1c   :  { %290 = vmatpush1.msra.mxu0 %v1264_v10 }
  0x1d   :  { %291 = vmatprep.subr.mxu0 %v1271_v11 }
  0x1e   :  { %292 = vmatpush1.msra.mxu0 %v1278_v12 }
  0x1f   :  { %293 = vmatprep.subr.mxu0 %v1285_v13 }
  0x20   :  { %294 = vmatpush1.msra.mxu0 %v1292_v14 }
  0x21   :  { %295 = vmatprep.subr.mxu0 %v1299_v15 }
  0x22   :  { %296 = vmatpush1.msra.mxu0 %v1306_v16 }
  0x23   :  { %493 = vmatprep.subr.mxu0 %v1206_v0 }
  0xd2   :  { %v119_v18 = vpop.f32.mrf.mxu0 }
  0xd3   :  { %v124_v20 = vadd.f32 %v119_v18, %v47_v17 }
  0xd4   :  { %v121_v21 = vpop.f32.mrf.mxu0 }
  0xd5   :  { %v999_v22 = vmul.f32 -1.442695, %v124_v20  ;;  %v125_v23 = vadd.f32 %v121_v21, %v48_v19 }
  0xd7   :  { %v1000_v24 = vmul.f32 -1.442695, %v125_v23  ;;  %1071 = vpow2.f32 %v999_v22  ;;  %v1006_v22 = vld [vmem:[%s1552_s0 + $0x20] sm:$0xff] }
  0xd9   :  { %1073 = vpow2.f32 %v1000_v24  ;;  %v1007_v24 = vld [vmem:[%s1552_s0 + $0x28] sm:$0xff] }
  0xe4   :  { %v1072_v25 = vpop.eup %1071 }
  0xe5   :  { %v132_v29 = vadd.f32 1.0, %v1072_v25 }
  0xe6   :  { %v1074_v27 = vpop.eup %1073 }
  0xe7   :  { %v133_v28 = vadd.f32 1.0, %v1074_v27 }
  0xe9   :  { %1075 = vrcp.f32 %v133_v28 }
  0xea   :  { %1077 = vrcp.f32 %v132_v29 }
  0xf6   :  { %v1076_v34 = vpop.eup %1075 }
  0xf7   :  { %v139_v36 = vmul.f32 %v1076_v34, %v1343_v33  ;;  %v1078_v38 = vpop.eup %1077 }
  0xf8   :  { %v142_v40 = vmul.f32 0.0, %v1078_v38 }
  0xf9   :  { %v141_v37 = vadd.f32 %v139_v36, %v1346_v35 }
  0xfb   :  { %v143_v39 = vmul.f32 %v1078_v38, %v141_v37 }
  0xfd   :  { %145 = vrot.lane.b32.xlu0 %v143_v39, %s1175_s24 }
 0x16f   :  { %v146_v41 = vpop.permute.xlu0 %145 }
 0x170   :  { %v148_v42 = vadd.f32 %v146_v41, %v142_v40 }
 0x172   :  { %1079 = vtanh.f32 %v148_v42 }
 0x17f   :  { %v1080_v43 = vpop.eup %1079 }
 0x180   :  { %v150_v44 = vmul.f32 %v1080_v43, %v141_v37 }
 0x182   :  { %155 = vrot.lane.b32.xlu0 %v150_v44, %s1175_s24 }
 0x1f4   :  { %v156_v45 = vpop.permute.xlu0 %155 }
 0x1f5   :  { %1003 = vmatmul.mubr.msk.f32.vlgmr.msra.gmra.mxu1 %vm49_vm1, %v156_v45 }
 0x1f6   :  { %388 = vmatpush1.msra.mxu1 %v1211_v1  ;;  %435 = vmatprep.mubr.f32.mxu1 %v1173_v4 }
 0x1f7   :  { %389 = vmatprep.subr.mxu1 %v1216_v2 }
 0x1f8   :  { %390 = vmatpush1.msra.mxu1 %v1222_v3 }
 0x1f9   :  { %391 = vmatprep.subr.mxu1 %v1229_v5 }
 0x1fa   :  { %392 = vmatpush1.msra.mxu1 %v1236_v6 }
 0x1fb   :  { %393 = vmatprep.subr.mxu1 %v1243_v7 }
 0x1fc   :  { %394 = vmatpush1.msra.mxu1 %v1250_v8 }
 0x1fd   :  { %395 = vmatprep.subr.mxu1 %v1257_v9 }
 0x1fe   :  { %396 = vmatpush1.msra.mxu1 %v1264_v10 }
 0x1ff   :  { %397 = vmatprep.subr.mxu1 %v1271_v11 }
 0x200   :  { %398 = vmatpush1.msra.mxu1 %v1278_v12 }
 0x201   :  { %399 = vmatprep.subr.mxu1 %v1285_v13 }
 0x202   :  { %400 = vmatpush1.msra.mxu1 %v1292_v14 }
 0x203   :  { %401 = vmatprep.subr.mxu1 %v1299_v15 }
 0x204   :  { %402 = vmatpush1.msra.mxu1 %v1306_v16 }
 0x205   :  { %599 = vmatprep.subr.mxu1 %v1206_v0 }
 0x2b5   :  { %v225_v47 = vpop.f32.mrf.mxu1 }
 0x2b6   :  { %v230_v49 = vadd.f32 %v1001_v46, %v225_v47  ;;  %v1011_v47 = vld [vmem:[%s1552_s0 + $0x30] sm:$0xff] }
 0x2b7   :  { %v227_v50 = vpop.f32.mrf.mxu1 }
 0x2b8   :  { %v1004_v51 = vmul.f32 -1.442695, %v230_v49  ;;  %v231_v52 = vadd.f32 %v1002_v48, %v227_v50  ;;  %v1012_v49 = vld [vmem:[%s1552_s0 + $0x38] sm:$0xff] }
 0x2ba   :  { %v1005_v53 = vmul.f32 -1.442695, %v231_v52  ;;  %1081 = vpow2.f32 %v1004_v51 }
 0x2bc   :  { %1083 = vpow2.f32 %v1005_v53 }
 0x2c7   :  { %v1082_v54 = vpop.eup %1081 }
 0x2c8   :  { %v238_v57 = vadd.f32 1.0, %v1082_v54 }
 0x2c9   :  { %v1084_v55 = vpop.eup %1083 }
 0x2ca   :  { %v239_v56 = vadd.f32 1.0, %v1084_v55 }
 0x2cc   :  { %1085 = vrcp.f32 %v239_v56 }
 0x2cd   :  { %1087 = vrcp.f32 %v238_v57 }
 0x2d9   :  { %v1086_v58 = vpop.eup %1085 }
 0x2da   :  { %v245_v59 = vmul.f32 %v1086_v58, %v1343_v33  ;;  %v1088_v61 = vpop.eup %1087 }
 0x2db   :  { %v248_v63 = vmul.f32 %v1088_v61, %v148_v42 }
 0x2dc   :  { %v247_v60 = vadd.f32 %v245_v59, %v1346_v35 }
 0x2de   :  { %v249_v62 = vmul.f32 %v1088_v61, %v247_v60 }
 0x2e0   :  { %251 = vrot.lane.b32.xlu1 %v249_v62, %s1175_s24 }
 0x352   :  { %v252_v17 = vpop.permute.xlu1 %251 }
 0x353   :  { %v254_v18 = vadd.f32 %v252_v17, %v248_v63 }
 0x355   :  { %1089 = vtanh.f32 %v254_v18 }
 0x362   :  { %v1090_v19 = vpop.eup %1089 }
 0x363   :  { %v256_v20 = vmul.f32 %v1090_v19, %v247_v60 }
 0x365   :  { %261 = vrot.lane.b32.xlu1 %v256_v20, %s1175_s24 }
 0x3d7   :  { %v262_v21 = vpop.permute.xlu1 %261 }
 0x3d8   :  { %1008 = vmatmul.mubr.msk.f32.vlgmr.msra.gmra.mxu0 %vm49_vm1, %v262_v21 }
 0x3d9   :  { %494 = vmatpush1.msra.mxu0 %v1211_v1  ;;  %541 = vmatprep.mubr.f32.mxu0 %v1173_v4 }
 0x3da   :  { %495 = vmatprep.subr.mxu0 %v1216_v2 }
 0x3db   :  { %496 = vmatpush1.msra.mxu0 %v1222_v3 }
 0x3dc   :  { %497 = vmatprep.subr.mxu0 %v1229_v5 }
 0x3dd   :  { %498 = vmatpush1.msra.mxu0 %v1236_v6 }
 0x3de   :  { %499 = vmatprep.subr.mxu0 %v1243_v7 }
 0x3df   :  { %500 = vmatpush1.msra.mxu0 %v1250_v8 }
 0x3e0   :  { %501 = vmatprep.subr.mxu0 %v1257_v9 }
 0x3e1   :  { %502 = vmatpush1.msra.mxu0 %v1264_v10 }
 0x3e2   :  { %503 = vmatprep.subr.mxu0 %v1271_v11 }
 0x3e3   :  { %504 = vmatpush1.msra.mxu0 %v1278_v12 }
 0x3e4   :  { %505 = vmatprep.subr.mxu0 %v1285_v13 }
 0x3e5   :  { %506 = vmatpush1.msra.mxu0 %v1292_v14 }
 0x3e6   :  { %507 = vmatprep.subr.mxu0 %v1299_v15 }
 0x3e7   :  { %508 = vmatpush1.msra.mxu0 %v1306_v16 }
 0x3e8   :  { %705 = vmatprep.subr.mxu0 %v1206_v0 }
 0x498   :  { %v331_v23 = vpop.f32.mrf.mxu0 }
 0x499   :  { %v336_v25 = vadd.f32 %v1006_v22, %v331_v23  ;;  %v1016_v22 = vld [vmem:[%s1552_s0 + $0x40] sm:$0xff] }
 0x49a   :  { %v333_v26 = vpop.f32.mrf.mxu0 }
 0x49b   :  { %v1009_v27 = vmul.f32 -1.442695, %v336_v25  ;;  %v337_v28 = vadd.f32 %v1007_v24, %v333_v26  ;;  %v1017_v24 = vld [vmem:[%s1552_s0 + $0x48] sm:$0xff] }
 0x49d   :  { %v1010_v29 = vmul.f32 -1.442695, %v337_v28  ;;  %1091 = vpow2.f32 %v1009_v27 }
 0x49f   :  { %1093 = vpow2.f32 %v1010_v29 }
 0x4aa   :  { %v1092_v30 = vpop.eup %1091 }
 0x4ab   :  { %v344_v34 = vadd.f32 1.0, %v1092_v30 }
 0x4ac   :  { %v1094_v31 = vpop.eup %1093 }
 0x4ad   :  { %v345_v32 = vadd.f32 1.0, %v1094_v31 }
 0x4af   :  { %1095 = vrcp.f32 %v345_v32 }
 0x4b0   :  { %1097 = vrcp.f32 %v344_v34 }
 0x4bc   :  { %v1096_v36 = vpop.eup %1095 }
 0x4bd   :  { %v351_v37 = vmul.f32 %v1096_v36, %v1343_v33  ;;  %v1098_v39 = vpop.eup %1097 }
 0x4be   :  { %v354_v41 = vmul.f32 %v1098_v39, %v254_v18 }
 0x4bf   :  { %v353_v38 = vadd.f32 %v351_v37, %v1346_v35 }
 0x4c1   :  { %v355_v40 = vmul.f32 %v1098_v39, %v353_v38 }
 0x4c3   :  { %357 = vrot.lane.b32.xlu0 %v355_v40, %s1175_s24 }
 0x535   :  { %v358_v42 = vpop.permute.xlu0 %357 }
 0x536   :  { %v360_v43 = vadd.f32 %v358_v42, %v354_v41 }
 0x538   :  { %1099 = vtanh.f32 %v360_v43 }
 0x545   :  { %v1100_v44 = vpop.eup %1099 }
 0x546   :  { %v362_v45 = vmul.f32 %v1100_v44, %v353_v38 }
 0x548   :  { %367 = vrot.lane.b32.xlu1 %v362_v45, %s1175_s24 }
 0x5ba   :  { %v368_v46 = vpop.permute.xlu1 %367 }
 0x5bb   :  { %1013 = vmatmul.mubr.msk.f32.vlgmr.msra.gmra.mxu1 %vm49_vm1, %v368_v46 }
 0x5bc   :  { %600 = vmatpush1.msra.mxu1 %v1211_v1  ;;  %647 = vmatprep.mubr.f32.mxu1 %v1173_v4 }
 0x5bd   :  { %601 = vmatprep.subr.mxu1 %v1216_v2 }
 0x5be   :  { %602 = vmatpush1.msra.mxu1 %v1222_v3 }
 0x5bf   :  { %603 = vmatprep.subr.mxu1 %v1229_v5 }
 0x5c0   :  { %604 = vmatpush1.msra.mxu1 %v1236_v6 }
 0x5c1   :  { %605 = vmatprep.subr.mxu1 %v1243_v7 }
 0x5c2   :  { %606 = vmatpush1.msra.mxu1 %v1250_v8 }
 0x5c3   :  { %607 = vmatprep.subr.mxu1 %v1257_v9 }
 0x5c4   :  { %608 = vmatpush1.msra.mxu1 %v1264_v10 }
 0x5c5   :  { %609 = vmatprep.subr.mxu1 %v1271_v11 }
 0x5c6   :  { %610 = vmatpush1.msra.mxu1 %v1278_v12 }
 0x5c7   :  { %611 = vmatprep.subr.mxu1 %v1285_v13 }
 0x5c8   :  { %612 = vmatpush1.msra.mxu1 %v1292_v14 }
 0x5c9   :  { %613 = vmatprep.subr.mxu1 %v1299_v15 }
 0x5ca   :  { %614 = vmatpush1.msra.mxu1 %v1306_v16 }
 0x5cb   :  { %811 = vmatprep.subr.mxu1 %v1206_v0 }
 0x67b   :  { %v437_v48 = vpop.f32.mrf.mxu1 }
 0x67c   :  { %v442_v50 = vadd.f32 %v1011_v47, %v437_v48 }
 0x67d   :  { %v439_v51 = vpop.f32.mrf.mxu1 }
 0x67e   :  { %v1014_v52 = vmul.f32 -1.442695, %v442_v50  ;;  %v443_v53 = vadd.f32 %v1012_v49, %v439_v51 }
 0x680   :  { %v1015_v54 = vmul.f32 -1.442695, %v443_v53  ;;  %1101 = vpow2.f32 %v1014_v52 }
 0x682   :  { %1103 = vpow2.f32 %v1015_v54 }
 0x68d   :  { %v1102_v55 = vpop.eup %1101 }
 0x68e   :  { %v450_v0 = vadd.f32 1.0, %v1102_v55  ;;  %v1026_v55 = vld [vmem:[%s1552_s0 + $0x60] sm:$0xff] }
 0x68f   :  { %v1104_v56 = vpop.eup %1103 }
 0x690   :  { %v451_v57 = vadd.f32 1.0, %v1104_v56 }
 0x692   :  { %1105 = vrcp.f32 %v451_v57  ;;  %v1027_v57 = vld [vmem:[%s1552_s0 + $0x68] sm:$0xff] }
 0x693   :  { %1107 = vrcp.f32 %v450_v0 }
 0x69f   :  { %v1106_v58 = vpop.eup %1105 }
 0x6a0   :  { %v457_v59 = vmul.f32 %v1106_v58, %v1343_v33  ;;  %v1108_v61 = vpop.eup %1107 }
 0x6a1   :  { %v460_v63 = vmul.f32 %v1108_v61, %v360_v43 }
 0x6a2   :  { %v459_v60 = vadd.f32 %v457_v59, %v1346_v35 }
 0x6a4   :  { %v461_v62 = vmul.f32 %v1108_v61, %v459_v60 }
 0x6a6   :  { %463 = vrot.lane.b32.xlu0 %v461_v62, %s1175_s24 }
 0x718   :  { %v464_v17 = vpop.permute.xlu0 %463 }
 0x719   :  { %v466_v18 = vadd.f32 %v464_v17, %v460_v63 }
 0x71b   :  { %1109 = vtanh.f32 %v466_v18 }
 0x728   :  { %v1110_v19 = vpop.eup %1109 }
 0x729   :  { %v468_v20 = vmul.f32 %v1110_v19, %v459_v60 }
 0x72b   :  { %473 = vrot.lane.b32.xlu1 %v468_v20, %s1175_s24 }
 0x79d   :  { %v474_v21 = vpop.permute.xlu1 %473 }
 0x79e   :  { %1018 = vmatmul.mubr.msk.f32.vlgmr.msra.gmra.mxu0 %vm49_vm1, %v474_v21 }
 0x79f   :  { %706 = vmatpush1.msra.mxu0 %v1211_v1  ;;  %753 = vmatprep.mubr.f32.mxu0 %v1173_v4 }
 0x7a0   :  { %707 = vmatprep.subr.mxu0 %v1216_v2 }
 0x7a1   :  { %708 = vmatpush1.msra.mxu0 %v1222_v3 }
 0x7a2   :  { %709 = vmatprep.subr.mxu0 %v1229_v5 }
 0x7a3   :  { %710 = vmatpush1.msra.mxu0 %v1236_v6 }
 0x7a4   :  { %711 = vmatprep.subr.mxu0 %v1243_v7 }
 0x7a5   :  { %712 = vmatpush1.msra.mxu0 %v1250_v8 }
 0x7a6   :  { %713 = vmatprep.subr.mxu0 %v1257_v9 }
 0x7a7   :  { %714 = vmatpush1.msra.mxu0 %v1264_v10 }
 0x7a8   :  { %715 = vmatprep.subr.mxu0 %v1271_v11 }
 0x7a9   :  { %716 = vmatpush1.msra.mxu0 %v1278_v12 }
 0x7aa   :  { %717 = vmatprep.subr.mxu0 %v1285_v13 }
 0x7ab   :  { %718 = vmatpush1.msra.mxu0 %v1292_v14 }
 0x7ac   :  { %719 = vmatprep.subr.mxu0 %v1299_v15 }
 0x7ad   :  { %720 = vmatpush1.msra.mxu0 %v1306_v16 }
 0x7ae   :  { %1047 = vmatprep.subr.mxu0 %v1173_v4 }
 0x85e   :  { %v543_v23 = vpop.f32.mrf.mxu0 }
 0x85f   :  { %v548_v25 = vadd.f32 %v1016_v22, %v543_v23 }
 0x860   :  { %v545_v26 = vpop.f32.mrf.mxu0 }
 0x861   :  { %v1019_v27 = vmul.f32 -1.442695, %v548_v25  ;;  %v549_v28 = vadd.f32 %v1017_v24, %v545_v26 }
 0x863   :  { %v1020_v29 = vmul.f32 -1.442695, %v549_v28  ;;  %1111 = vpow2.f32 %v1019_v27 }
 0x865   :  { %1113 = vpow2.f32 %v1020_v29 }
 0x870   :  { %v1112_v30 = vpop.eup %1111 }
 0x871   :  { %v556_v34 = vadd.f32 1.0, %v1112_v30  ;;  %v1031_v30 = vld [vmem:[%s1552_s0 + $0x70] sm:$0xff] }
 0x872   :  { %v1114_v31 = vpop.eup %1113 }
 0x873   :  { %v557_v32 = vadd.f32 1.0, %v1114_v31 }
 0x875   :  { %1115 = vrcp.f32 %v557_v32  ;;  %v1032_v32 = vld [vmem:[%s1552_s0 + $0x78] sm:$0xff] }
 0x876   :  { %1117 = vrcp.f32 %v556_v34 }
 0x882   :  { %v1116_v36 = vpop.eup %1115 }
 0x883   :  { %v563_v37 = vmul.f32 %v1116_v36, %v1343_v33  ;;  %v1118_v39 = vpop.eup %1117 }
 0x884   :  { %v566_v41 = vmul.f32 %v1118_v39, %v466_v18 }
 0x885   :  { %v565_v38 = vadd.f32 %v563_v37, %v1346_v35 }
 0x887   :  { %v567_v40 = vmul.f32 %v1118_v39, %v565_v38 }
 0x889   :  { %569 = vrot.lane.b32.xlu0 %v567_v40, %s1175_s24 }
 0x8fb   :  { %v570_v42 = vpop.permute.xlu0 %569 }
 0x8fc   :  { %v572_v43 = vadd.f32 %v570_v42, %v566_v41 }
 0x8fe   :  { %1119 = vtanh.f32 %v572_v43 }
 0x90b   :  { %v1120_v44 = vpop.eup %1119 }
 0x90c   :  { %v574_v45 = vmul.f32 %v1120_v44, %v565_v38 }
 0x90e   :  { %579 = vrot.lane.b32.xlu1 %v574_v45, %s1175_s24 }
 0x980   :  { %v580_v46 = vpop.permute.xlu1 %579 }
 0x981   :  { %1023 = vmatmul.mubr.msk.f32.vlgmr.msra.gmra.mxu1 %vm49_vm1, %v580_v46 }
 0x982   :  { %812 = vmatpush1.msra.mxu1 %v1211_v1  ;;  %859 = vmatprep.mubr.f32.mxu1 %v1173_v4  ;;  %v1021_v1 = vld [vmem:[%s1552_s0 + $0x50] sm:$0xff] }
 0x983   :  { %813 = vmatprep.subr.mxu1 %v1216_v2 }
 0x984   :  { %814 = vmatpush1.msra.mxu1 %v1222_v3  ;;  %v1022_v3 = vld [vmem:[%s1552_s0 + $0x58] sm:$0xff] }
 0x985   :  { %815 = vmatprep.subr.mxu1 %v1229_v5 }
 0x986   :  { %816 = vmatpush1.msra.mxu1 %v1236_v6 }
 0x987   :  { %817 = vmatprep.subr.mxu1 %v1243_v7 }
 0x988   :  { %818 = vmatpush1.msra.mxu1 %v1250_v8 }
 0x989   :  { %819 = vmatprep.subr.mxu1 %v1257_v9 }
 0x98a   :  { %820 = vmatpush1.msra.mxu1 %v1264_v10 }
 0x98b   :  { %821 = vmatprep.subr.mxu1 %v1271_v11 }
 0x98c   :  { %822 = vmatpush1.msra.mxu1 %v1278_v12 }
 0x98d   :  { %823 = vmatprep.subr.mxu1 %v1285_v13 }
 0x98e   :  { %824 = vmatpush1.msra.mxu1 %v1292_v14 }
 0x98f   :  { %825 = vmatprep.subr.mxu1 %v1299_v15 }
 0x990   :  { %826 = vmatpush1.msra.mxu1 %v1306_v16 }
 0xa41   :  { %v649_v2 = vpop.f32.mrf.mxu1 }
 0xa42   :  { %v654_v5 = vadd.f32 %v1021_v1, %v649_v2 }
 0xa43   :  { %v651_v6 = vpop.f32.mrf.mxu1 }
 0xa44   :  { %v1024_v7 = vmul.f32 -1.442695, %v654_v5  ;;  %v655_v8 = vadd.f32 %v1022_v3, %v651_v6  ;;  %v900_v3 = vld [vmem:[%s1554_s2 + $0x38] sm:$0xff]  ;;  %v899_v5 = vld [vmem:[%s1554_s2 + $0x30] sm:$0xff] }
 0xa45   :  { %v896_v6 = vld [vmem:[%s1554_s2 + $0x18] sm:$0xff] }
 0xa46   :  { %v1025_v9 = vmul.f32 -1.442695, %v655_v8  ;;  %1121 = vpow2.f32 %v1024_v7  ;;  %v895_v7 = vld [vmem:[%s1554_s2 + $0x10] sm:$0xff]  ;;  %v894_v8 = vld [vmem:[%s1554_s2 + $0x8] sm:$0xff] }
 0xa48   :  { %1123 = vpow2.f32 %v1025_v9  ;;  %v893_v9 = vld [vmem:[%s1554_s2] sm:$0xff] }
 0xa53   :  { %v1122_v10 = vpop.eup %1121 }
 0xa54   :  { %v662_v13 = vadd.f32 1.0, %v1122_v10 }
 0xa55   :  { %v1124_v11 = vpop.eup %1123 }
 0xa56   :  { %v663_v12 = vadd.f32 1.0, %v1124_v11 }
 0xa58   :  { %1125 = vrcp.f32 %v663_v12 }
 0xa59   :  { %1127 = vrcp.f32 %v662_v13 }
 0xa65   :  { %v1126_v14 = vpop.eup %1125 }
 0xa66   :  { %v669_v15 = vmul.f32 %v1126_v14, %v1343_v33  ;;  %v1128_v47 = vpop.eup %1127 }
 0xa67   :  { %v672_v49 = vmul.f32 %v1128_v47, %v572_v43 }
 0xa68   :  { %v671_v16 = vadd.f32 %v669_v15, %v1346_v35 }
 0xa6a   :  { %v673_v48 = vmul.f32 %v1128_v47, %v671_v16 }
 0xa6c   :  { %675 = vrot.lane.b32.xlu0 %v673_v48, %s1175_s24 }
 0xade   :  { %v676_v50 = vpop.permute.xlu0 %675 }
 0xadf   :  { %v678_v51 = vadd.f32 %v676_v50, %v672_v49 }
 0xae1   :  { %1129 = vtanh.f32 %v678_v51 }
 0xaee   :  { %v1130_v52 = vpop.eup %1129 }
 0xaef   :  { %v680_v53 = vmul.f32 %v1130_v52, %v671_v16  ;;  %v1036_v16 = vld [vmem:[%s1555_s3] ss:$0 sm:$0xff] }
 0xaf1   :  { %685 = vrot.lane.b32.xlu1 %v680_v53, %s1175_s24 }
 0xb63   :  { %v686_v54 = vpop.permute.xlu1 %685 }
 0xb64   :  { %1028 = vmatmul.mubr.msk.f32.vlgmr.msra.gmra.mxu0 %vm49_vm1, %v686_v54 }
 0xb65   :  { %1048 = vmatpush3.msra.mxu0 %v900_v3  ;;  %1063 = vmatprep.mubr.msk.f32.mxu0 %vm1176_vm2, %v1173_v4 }
 0xb66   :  { %1049 = vmatprep.subr.mxu0 %v1173_v4 }
 0xb67   :  { %1050 = vmatpush3.msra.mxu0 %v899_v5 }
 0xb68   :  { %1051 = vmatprep.subr.mxu0 %v1173_v4 }
 0xc24   :  { %v755_v56 = vpop.f32.mrf.mxu0 }
 0xc25   :  { %v760_v0 = vadd.f32 %v1026_v55, %v755_v56 }
 0xc26   :  { %v757_v58 = vpop.f32.mrf.mxu0 }
 0xc27   :  { %v1029_v59 = vmul.f32 -1.442695, %v760_v0  ;;  %v761_v60 = vadd.f32 %v1027_v57, %v757_v58 }
 0xc29   :  { %v1030_v61 = vmul.f32 -1.442695, %v761_v60  ;;  %1131 = vpow2.f32 %v1029_v59 }
 0xc2b   :  { %1133 = vpow2.f32 %v1030_v61 }
 0xc36   :  { %v1132_v62 = vpop.eup %1131 }
 0xc37   :  { %v768_v18 = vadd.f32 1.0, %v1132_v62 }
 0xc38   :  { %v1134_v63 = vpop.eup %1133 }
 0xc39   :  { %v769_v17 = vadd.f32 1.0, %v1134_v63 }
 0xc3b   :  { %1135 = vrcp.f32 %v769_v17 }
 0xc3c   :  { %1137 = vrcp.f32 %v768_v18 }
 0xc48   :  { %v1136_v19 = vpop.eup %1135 }
 0xc49   :  { %v775_v20 = vmul.f32 %v1136_v19, %v1343_v33  ;;  %v1138_v22 = vpop.eup %1137 }
 0xc4a   :  { %v778_v24 = vmul.f32 %v1138_v22, %v678_v51 }
 0xc4b   :  { %v777_v21 = vadd.f32 %v775_v20, %v1346_v35 }
 0xc4d   :  { %v779_v23 = vmul.f32 %v1138_v22, %v777_v21 }
 0xc4f   :  { %781 = vrot.lane.b32.xlu0 %v779_v23, %s1175_s24 }
 0xcc1   :  { %v782_v25 = vpop.permute.xlu0 %781 }
 0xcc2   :  { %v784_v26 = vadd.f32 %v782_v25, %v778_v24 }
 0xcc4   :  { %1139 = vtanh.f32 %v784_v26 }
 0xcd1   :  { %v1140_v27 = vpop.eup %1139 }
 0xcd2   :  { %v786_v28 = vmul.f32 %v1140_v27, %v777_v21 }
 0xcd4   :  { %791 = vrot.lane.b32.xlu1 %v786_v28, %s1175_s24 }
 0xd46   :  { %v792_v29 = vpop.permute.xlu1 %791 }
 0xd47   :  { %1033 = vmatmul.mubr.msk.f32.vlgmr.msra.gmra.mxu1 %vm49_vm1, %v792_v29 }
 0xe07   :  { %v861_v31 = vpop.f32.mrf.mxu1 }
 0xe08   :  { %v866_v34 = vadd.f32 %v1031_v30, %v861_v31 }
 0xe09   :  { %v863_v36 = vpop.f32.mrf.mxu1 }
 0xe0a   :  { %v1034_v37 = vmul.f32 -1.442695, %v866_v34  ;;  %v867_v38 = vadd.f32 %v1032_v32, %v863_v36 }
 0xe0c   :  { %v1035_v39 = vmul.f32 -1.442695, %v867_v38  ;;  %1141 = vpow2.f32 %v1034_v37 }
 0xe0e   :  { %1143 = vpow2.f32 %v1035_v39 }
 0xe19   :  { %v1142_v40 = vpop.eup %1141 }
 0xe1a   :  { %v874_v43 = vadd.f32 1.0, %v1142_v40 }
 0xe1b   :  { %v1144_v41 = vpop.eup %1143 }
 0xe1c   :  { %v875_v42 = vadd.f32 1.0, %v1144_v41 }
 0xe1e   :  { %1145 = vrcp.f32 %v875_v42 }
 0xe1f   :  { %1147 = vrcp.f32 %v874_v43 }
 0xe2b   :  { %v1146_v44 = vpop.eup %1145 }
 0xe2c   :  { %v881_v45 = vmul.f32 %v1146_v44, %v1343_v33  ;;  %v1148_v1 = vpop.eup %1147  ;;  %v898_v33 = vld [vmem:[%s1554_s2 + $0x28] sm:$0xff] }
 0xe2d   :  { %1052 = vmatpush3.msra.mxu0 %v898_v33  ;;  %v884_v10 = vmul.f32 %v1148_v1, %v784_v26 }
 0xe2e   :  { %v883_v46 = vadd.f32 %v881_v45, %v1346_v35  ;;  %v897_v35 = vld [vmem:[%s1554_s2 + $0x20] sm:$0xff]  ;;  %1053 = vmatprep.subr.mxu0 %v1173_v4  ;;  %s1177_s2 = smov [#allocation2]  }
 0xe2f   :  { %1054 = vmatpush3.msra.mxu0 %v897_v35  ;;  %s991_s18 = sshll.u32 %s1177_s2, 4  ;;  %s992_s18 = int_to_ptr.vmem [resolvable:$true] %s991_s18 }
 0xe30   :  { %v885_v2 = vmul.f32 %v1148_v1, %v883_v46  ;;  %1055 = vmatprep.subr.mxu0 %v1173_v4  ;;  %s1151_s19 = scalar_lea.vmem %s992_s18, 32  ;;  %p1156_p1 = scmp.lt.s32.totalorder %s992_s18, %s992_s18 }
 0xe31   :  { %1056 = vmatpush3.msra.mxu0 %v896_v6  ;;  %p1152_p0 = scmp.ne.s32.totalorder %s992_s18, %s1151_s19  ;;  %p1157_p2 = scmp.lt.s32.totalorder %s1151_s19, %s1151_s19 }
 0xe32   :  { %887 = vrot.lane.b32.xlu0 %v885_v2, %s1175_s24  ;;  %1057 = vmatprep.subr.mxu0 %v1173_v4 }
 0xe33   :  { %1058 = vmatpush3.msra.mxu0 %v895_v7  ;;  %p1158_p3 = por %p1157_p2, %p1156_p1 }
 0xe34   :  { %1059 = vmatprep.subr.mxu0 %v1173_v4 }
 0xe35   :  { %1060 = vmatpush3.msra.mxu0 %v894_v8  ;;  %p1159_p4 = pnand %p1158_p3, %p1152_p0 }
 0xe36   :  { %1061 = vmatprep.subr.mxu0 %v1173_v4 }
 0xe37   :  { %1062 = vmatpush3.msra.mxu0 %v893_v9 }
 0xea4   :  { %v888_v11 = vpop.permute.xlu0 %887 }
 0xea5   :  { %v890_v12 = vadd.f32 %v888_v11, %v884_v10 }
 0xea7   :  { %1149 = vtanh.f32 %v890_v12 }
 0xeb4   :  { %v1150_v13 = vpop.eup %1149 }
 0xeb5   :  { %v892_v14 = vmul.f32 %v1150_v13, %v883_v46 }
 0xeb7   :  { %909 = vrot.lane.b32.xlu1 %v892_v14, %s1175_s24 }
 0xf29   :  { %v910_v15 = vpop.permute.xlu1 %909 }
 0xf2a   :  { %1064 = vmatmul.mubr.msk.f32.vlgmr.msra.gmra.mxu0 %vm49_vm1, %v910_v15 }
 0xfea   :  { %v979_v47 = vpop.f32.mrf.mxu0 }
 0xfeb   :  { %v980_v4 = vadd.f32 %v1036_v16, %v979_v47 }
 0xfec   :  { %v1065_v48 = vpop.f32.mrf.mxu0 }
 0xfed   :  { %984 = vst.msk [vmem:[#allocation2] sm:$0x3] %vm983_vm3, %v980_v4 }
 0xfee   :  { %1162 = shalt.err (!%p1159_p4)
}
 0xfef   :  { %994 = dma.vmem_to_hbm [thread:$0]  %s992_s18, 32, %s1556_s4, [#allocation3]  }
 0xff0   :  { %1171 = dma.done.wait [#allocation3], 32  }
 0xff1   :  { %1172 = vsyncadd [#allocation3], 4294967264 }
 0xff2   :  { %998 = vsyncpa [#allocation3], 1 }

</bundles_post_ra>
